<compile_context>
chip_gen: v7x
topology: tpu7x:2x2x1
jax: 0.10.0
libtpu: 0.0.40
codegen_flags: <defaults>
</compile_context>

<pallas_src>
import functools

import jax
import jax.numpy as jnp
from jax.experimental import pallas as pl
from jax.experimental.pallas import tpu as pltpu


LANE = 128      # lane width: pad narrow feature dims up to this
SUBLANE = 8     # f32 sublane width
MXU_ROWS = 128  # row alignment for multi-tile batch blocks


def _round_up(n, m):
    return ((n + m - 1) // m) * m


def _cdiv(a, b):
    return -(-a // b)


def _mlp_kernel(x_ref,
                w1_ref, b1_ref,
                w2_ref, b2_ref,
                w3_ref, b3_ref,
                w4_ref, b4_ref,
                o_ref):
    """Fused 4-layer MLP on one batch tile.

    x tile is bf16 in VMEM; weights are bf16 (VMEM-resident across grid steps).
    Each matmul accumulates in f32 on the MXU; bias add + ReLU run in f32 on
    the VPU; activations are cast back to bf16 only at the MXU boundary.
    """
    # fc1 + ReLU   (dropout = identity at inference)
    h = jnp.dot(x_ref[...], w1_ref[...],
                preferred_element_type=jnp.float32) + b1_ref[...]
    h = jnp.maximum(h, 0.0)

    # fc2 + ReLU
    h = jnp.dot(h.astype(jnp.bfloat16), w2_ref[...],
                preferred_element_type=jnp.float32) + b2_ref[...]
    h = jnp.maximum(h, 0.0)

    # fc3 + ReLU (width zero-padded to 128 lanes; padded cols are exactly 0)
    h = jnp.dot(h.astype(jnp.bfloat16), w3_ref[...],
                preferred_element_type=jnp.float32) + b3_ref[...]
    h = jnp.maximum(h, 0.0)

    # fc4 (no activation; output zero-padded to 128 lanes, sliced in wrapper)
    out = jnp.dot(h.astype(jnp.bfloat16), w4_ref[...],
                  preferred_element_type=jnp.float32) + b4_ref[...]
    o_ref[...] = out.astype(o_ref.dtype)

    # TODO(synk): training-mode dropout (stochastic masking via pltpu.prng_*)
    # is not implemented; inference-mode dropout is the identity.


def _resident_spec(arr):
    """Full-array BlockSpec with a constant index_map over the 1-D batch grid.

    Rank is bound via a default argument (no late-binding bug). Constant block
    index -> the operand stays VMEM-resident across grid steps.
    """
    return pl.BlockSpec(arr.shape, lambda i, _nd=arr.ndim: (0,) * _nd)


def _choose_tile(batch, block_batch):
    """Balanced batch tile: minimal padding, MXU-friendly alignment, and
    >= 2 grid steps for large batches so v7x's second TC isn't idle."""
    n_tiles = max(1, _cdiv(batch, block_batch))
    if n_tiles == 1 and batch >= 512:
        n_tiles = 2
    per_tile = _cdiv(batch, n_tiles)
    if n_tiles == 1:
        # single tile: block equals the (padded) full batch dim -> always legal
        return _round_up(per_tile, SUBLANE)
    return _round_up(per_tile, MXU_ROWS)


def init_params(key, input_dim, output_dim, hidden_dim):
    """Parameter init mirroring torch nn.Linear default uniform init.

    Stored transposed: w_i has shape (in_features, out_features); b_i is (1, out).
    """
    dims = [
        (input_dim, hidden_dim),             # fc1
        (hidden_dim, hidden_dim // 2),       # fc2
        (hidden_dim // 2, hidden_dim // 4),  # fc3
        (hidden_dim // 4, output_dim),       # fc4
    ]
    params = {}
    for i, (fan_in, fan_out) in enumerate(dims, start=1):
        key, kw, kb = jax.random.split(key, 3)
        bound = 1.0 / (fan_in ** 0.5)
        params[f"w{i}"] = jax.random.uniform(
            kw, (fan_in, fan_out), jnp.float32, minval=-bound, maxval=bound)
        params[f"b{i}"] = jax.random.uniform(
            kb, (1, fan_out), jnp.float32, minval=-bound, maxval=bound)
    return params


def prepare_params(params):
    """One-time prep: zero-pad narrow widths to 128 lanes, cast weights to bf16.

    Zero-padding is semantically transparent: padded weight columns + zero bias
    give relu(0) = 0 activations, and the corresponding (zero) weight rows of
    the next layer contribute nothing.  Only arrays go in here (no Python ints)
    so the dict is a clean jit pytree.
    """
    prepped = {}
    for i in range(1, 5):
        w = params[f"w{i}"]
        b = params[f"b{i}"]
        fan_in, fan_out = w.shape
        pad_in = _round_up(fan_in, LANE) if i > 1 else fan_in   # in-dim of fc1 = raw x
        pad_out = _round_up(fan_out, LANE)
        w = jnp.pad(w, ((0, pad_in - fan_in), (0, pad_out - fan_out)))
        b = jnp.pad(b, ((0, 0), (0, pad_out - fan_out)))
        prepped[f"w{i}"] = w.astype(jnp.bfloat16)   # bf16 on the MXU
        prepped[f"b{i}"] = b                        # bias stays f32
    return prepped


@functools.partial(jax.jit, static_argnames=("out_dim", "block_batch"))
def mlp_regression_forward(x, prepped, out_dim, *, block_batch=2048):
    """Fused MLP forward.

    x:       (B, input_dim) float32 (cast to bf16 for the kernel)
    prepped: output of prepare_params() (arrays only)
    out_dim: static real output width (padded width is sliced back down)
    """
    B, input_dim = x.shape
    pad_out_dim = prepped["w4"].shape[1]

    tb = _choose_tile(B, block_batch)
    padded_b = _round_up(B, tb)

    # bf16 x: halves the x HBM stream and the x double-buffer in VMEM.
    x = x.astype(jnp.bfloat16)
    if padded_b != B:
        x = jnp.pad(x, ((0, padded_b - B), (0, 0)))

    operands = (
        x,
        prepped["w1"], prepped["b1"],
        prepped["w2"], prepped["b2"],
        prepped["w3"], prepped["b3"],
        prepped["w4"], prepped["b4"],
    )

    in_specs = [
        # x: tiled over the batch grid (DMA pipelined by Pallas).
        pl.BlockSpec((tb, input_dim), lambda i: (i, 0)),
        # weights / biases: full-array, constant index_map -> VMEM-resident.
    ] + [_resident_spec(op) for op in operands[1:]]

    out_spec = pl.BlockSpec((tb, pad_out_dim), lambda i: (i, 0))

    out = pl.pallas_call(
        _mlp_kernel,
        out_shape=jax.ShapeDtypeStruct((padded_b, pad_out_dim), jnp.float32),
        grid=(padded_b // tb,),
        in_specs=in_specs,
        out_specs=out_spec,
        compiler_params=pltpu.CompilerParams(
            dimension_semantics=("parallel",),   # shard batch tiles across TCs
        ),
    )(*operands)

    # Slice away batch and lane padding (static bounds).
    return out[:B, :out_dim]


def reference_forward(x, params):
    """Plain-JAX f32 reference (unpadded params) for correctness checking."""
    h = jnp.maximum(x @ params["w1"] + params["b1"], 0.0)
    h = jnp.maximum(h @ params["w2"] + params["b2"], 0.0)
    h = jnp.maximum(h @ params["w3"] + params["b3"], 0.0)
    return h @ params["w4"] + params["b4"]


if __name__ == "__main__":
    key = jax.random.PRNGKey(0)

    # Small shapes consistent with the module: batch=8, input_dim=32,
    # hidden_dim=256 (so hidden//2=128, hidden//4=64), output_dim=8.
    batch, input_dim, hidden_dim, output_dim = 8, 32, 256, 8

    key, kx = jax.random.split(key)
    x = jax.random.normal(kx, (batch, input_dim), jnp.float32)
    params = init_params(key, input_dim, output_dim, hidden_dim)
    prepped = prepare_params(params)

    out = mlp_regression_forward(x, prepped, output_dim)
    out = jax.block_until_ready(out)

    ref = reference_forward(x, params)
    assert out.shape == (batch, output_dim), out.shape
    # bf16 weights/activations with f32 accumulation: loosened tolerance vs
    # the f32 reference (~1e-2 relative error expected).
    max_err = float(jnp.max(jnp.abs(out - ref)))
    assert jnp.allclose(out, ref, atol=5e-2, rtol=5e-2), (
        "mismatch vs reference: max abs err = %g" % max_err)

    print("KERNEL_OK")
</pallas_src>

<mosaic_0001>
module attributes {stable_mosaic.version = 11 : i64} {
  func.func @_mlp_kernel(%arg0: i32, %arg1: memref<8x32xbf16, #tpu.memory_space<vmem>>, %arg2: memref<32x256xbf16, #tpu.memory_space<vmem>>, %arg3: memref<1x256xf32, #tpu.memory_space<vmem>>, %arg4: memref<256x128xbf16, #tpu.memory_space<vmem>>, %arg5: memref<1x128xf32, #tpu.memory_space<vmem>>, %arg6: memref<128x128xbf16, #tpu.memory_space<vmem>>, %arg7: memref<1x128xf32, #tpu.memory_space<vmem>>, %arg8: memref<128x128xbf16, #tpu.memory_space<vmem>>, %arg9: memref<1x128xf32, #tpu.memory_space<vmem>>, %arg10: memref<8x128xf32, #tpu.memory_space<vmem>>) attributes {dimension_semantics = [#tpu.dimension_semantics<parallel>], iteration_bounds = array<i64: 1>, scalar_prefetch = 0 : i64, scratch_operands = 0 : i64, tpu.core_type = #tpu.core_type<tc>, window_params = [{transform_indices = @transform_0, window_bounds = array<i64: 8, 32>}, {pipeline_mode = #tpu.pipeline_mode<synchronous>, transform_indices = @transform_1, window_bounds = array<i64: 32, 256>}, {pipeline_mode = #tpu.pipeline_mode<synchronous>, transform_indices = @transform_2, window_bounds = array<i64: 1, 256>}, {pipeline_mode = #tpu.pipeline_mode<synchronous>, transform_indices = @transform_3, window_bounds = array<i64: 256, 128>}, {pipeline_mode = #tpu.pipeline_mode<synchronous>, transform_indices = @transform_4, window_bounds = array<i64: 1, 128>}, {pipeline_mode = #tpu.pipeline_mode<synchronous>, transform_indices = @transform_5, window_bounds = array<i64: 128, 128>}, {pipeline_mode = #tpu.pipeline_mode<synchronous>, transform_indices = @transform_6, window_bounds = array<i64: 1, 128>}, {pipeline_mode = #tpu.pipeline_mode<synchronous>, transform_indices = @transform_7, window_bounds = array<i64: 128, 128>}, {pipeline_mode = #tpu.pipeline_mode<synchronous>, transform_indices = @transform_8, window_bounds = array<i64: 1, 128>}, {transform_indices = @transform_9, window_bounds = array<i64: 8, 128>}]} {
    %c0 = arith.constant 0 : index
    %c0_0 = arith.constant 0 : index
    %0 = vector.load %arg1[%c0, %c0_0] : memref<8x32xbf16, #tpu.memory_space<vmem>>, vector<8x32xbf16>
    %c0_1 = arith.constant 0 : index
    %c0_2 = arith.constant 0 : index
    %1 = vector.load %arg2[%c0_1, %c0_2] : memref<32x256xbf16, #tpu.memory_space<vmem>>, vector<32x256xbf16>
    %cst = arith.constant dense<0.000000e+00> : vector<8x256xf32>
    %2 = tpu.matmul %0, %1, %cst {dimension_numbers = #tpu.dot_dimension_numbers<[1], [0], [0], [1], [0, 0, 1, 1], [], []>} : vector<8x32xbf16>, vector<32x256xbf16>, vector<8x256xf32> -> vector<8x256xf32>
    %c0_3 = arith.constant 0 : index
    %c0_4 = arith.constant 0 : index
    %3 = vector.load %arg3[%c0_3, %c0_4] : memref<1x256xf32, #tpu.memory_space<vmem>>, vector<1x256xf32>
    %4 = vector.broadcast %3 : vector<1x256xf32> to vector<8x256xf32>
    %5 = arith.addf %2, %4 : vector<8x256xf32>
    %cst_5 = arith.constant 0.000000e+00 : f32
    %6 = vector.broadcast %cst_5 : f32 to vector<8x256xf32>
    %7 = arith.maximumf %5, %6 : vector<8x256xf32>
    %8 = arith.truncf %7 : vector<8x256xf32> to vector<8x256xbf16>
    %c0_6 = arith.constant 0 : index
    %c0_7 = arith.constant 0 : index
    %9 = vector.load %arg4[%c0_6, %c0_7] : memref<256x128xbf16, #tpu.memory_space<vmem>>, vector<256x128xbf16>
    %cst_8 = arith.constant dense<0.000000e+00> : vector<8x128xf32>
    %10 = tpu.matmul %8, %9, %cst_8 {dimension_numbers = #tpu.dot_dimension_numbers<[1], [0], [0], [1], [0, 0, 1, 1], [], []>} : vector<8x256xbf16>, vector<256x128xbf16>, vector<8x128xf32> -> vector<8x128xf32>
    %c0_9 = arith.constant 0 : index
    %c0_10 = arith.constant 0 : index
    %11 = vector.load %arg5[%c0_9, %c0_10] : memref<1x128xf32, #tpu.memory_space<vmem>>, vector<1x128xf32>
    %12 = vector.broadcast %11 : vector<1x128xf32> to vector<8x128xf32>
    %13 = arith.addf %10, %12 : vector<8x128xf32>
    %cst_11 = arith.constant 0.000000e+00 : f32
    %14 = vector.broadcast %cst_11 : f32 to vector<8x128xf32>
    %15 = arith.maximumf %13, %14 : vector<8x128xf32>
    %16 = arith.truncf %15 : vector<8x128xf32> to vector<8x128xbf16>
    %c0_12 = arith.constant 0 : index
    %c0_13 = arith.constant 0 : index
    %17 = vector.load %arg6[%c0_12, %c0_13] : memref<128x128xbf16, #tpu.memory_space<vmem>>, vector<128x128xbf16>
    %cst_14 = arith.constant dense<0.000000e+00> : vector<8x128xf32>
    %18 = tpu.matmul %16, %17, %cst_14 {dimension_numbers = #tpu.dot_dimension_numbers<[1], [0], [0], [1], [0, 0, 1, 1], [], []>} : vector<8x128xbf16>, vector<128x128xbf16>, vector<8x128xf32> -> vector<8x128xf32>
    %c0_15 = arith.constant 0 : index
    %c0_16 = arith.constant 0 : index
    %19 = vector.load %arg7[%c0_15, %c0_16] : memref<1x128xf32, #tpu.memory_space<vmem>>, vector<1x128xf32>
    %20 = vector.broadcast %19 : vector<1x128xf32> to vector<8x128xf32>
    %21 = arith.addf %18, %20 : vector<8x128xf32>
    %cst_17 = arith.constant 0.000000e+00 : f32
    %22 = vector.broadcast %cst_17 : f32 to vector<8x128xf32>
    %23 = arith.maximumf %21, %22 : vector<8x128xf32>
    %24 = arith.truncf %23 : vector<8x128xf32> to vector<8x128xbf16>
    %c0_18 = arith.constant 0 : index
    %c0_19 = arith.constant 0 : index
    %25 = vector.load %arg8[%c0_18, %c0_19] : memref<128x128xbf16, #tpu.memory_space<vmem>>, vector<128x128xbf16>
    %cst_20 = arith.constant dense<0.000000e+00> : vector<8x128xf32>
    %26 = tpu.matmul %24, %25, %cst_20 {dimension_numbers = #tpu.dot_dimension_numbers<[1], [0], [0], [1], [0, 0, 1, 1], [], []>} : vector<8x128xbf16>, vector<128x128xbf16>, vector<8x128xf32> -> vector<8x128xf32>
    %c0_21 = arith.constant 0 : index
    %c0_22 = arith.constant 0 : index
    %27 = vector.load %arg9[%c0_21, %c0_22] : memref<1x128xf32, #tpu.memory_space<vmem>>, vector<1x128xf32>
    %28 = vector.broadcast %27 : vector<1x128xf32> to vector<8x128xf32>
    %29 = arith.addf %26, %28 : vector<8x128xf32>
    %c0_23 = arith.constant 0 : index
    %c0_24 = arith.constant 0 : index
    %30 = vector.load %arg10[%c0_23, %c0_24] : memref<8x128xf32, #tpu.memory_space<vmem>>, vector<8x128xf32>
    tpu.vector_store %arg10[%c0_23, %c0_24], %29 {strides = array<i32>} : memref<8x128xf32, #tpu.memory_space<vmem>>, vector<8x128xf32>,
    return
  }
  func.func @transform_0(%arg0: i32) -> (i32, i32) {
    %c0_i32 = arith.constant 0 : i32
    %c0_i32_0 = arith.constant 0 : i32
    return %arg0, %c0_i32 : i32, i32
  }
  func.func @transform_1(%arg0: i32) -> (i32, i32) {
    %c0_i32 = arith.constant 0 : i32
    %c0_i32_0 = arith.constant 0 : i32
    %c0_i32_1 = arith.constant 0 : i32
    return %c0_i32, %c0_i32_0 : i32, i32
  }
  func.func @transform_2(%arg0: i32) -> (i32, i32) {
    %c0_i32 = arith.constant 0 : i32
    %c0_i32_0 = arith.constant 0 : i32
    %c0_i32_1 = arith.constant 0 : i32
    return %c0_i32, %c0_i32_0 : i32, i32
  }
  func.func @transform_3(%arg0: i32) -> (i32, i32) {
    %c0_i32 = arith.constant 0 : i32
    %c0_i32_0 = arith.constant 0 : i32
    %c0_i32_1 = arith.constant 0 : i32
    return %c0_i32, %c0_i32_0 : i32, i32
  }
  func.func @transform_4(%arg0: i32) -> (i32, i32) {
    %c0_i32 = arith.constant 0 : i32
    %c0_i32_0 = arith.constant 0 : i32
    %c0_i32_1 = arith.constant 0 : i32
    return %c0_i32, %c0_i32_0 : i32, i32
  }
  func.func @transform_5(%arg0: i32) -> (i32, i32) {
    %c0_i32 = arith.constant 0 : i32
    %c0_i32_0 = arith.constant 0 : i32
    %c0_i32_1 = arith.constant 0 : i32
    return %c0_i32, %c0_i32_0 : i32, i32
  }
  func.func @transform_6(%arg0: i32) -> (i32, i32) {
    %c0_i32 = arith.constant 0 : i32
    %c0_i32_0 = arith.constant 0 : i32
    %c0_i32_1 = arith.constant 0 : i32
    return %c0_i32, %c0_i32_0 : i32, i32
  }
  func.func @transform_7(%arg0: i32) -> (i32, i32) {
    %c0_i32 = arith.constant 0 : i32
    %c0_i32_0 = arith.constant 0 : i32
    %c0_i32_1 = arith.constant 0 : i32
    return %c0_i32, %c0_i32_0 : i32, i32
  }
  func.func @transform_8(%arg0: i32) -> (i32, i32) {
    %c0_i32 = arith.constant 0 : i32
    %c0_i32_0 = arith.constant 0 : i32
    %c0_i32_1 = arith.constant 0 : i32
    return %c0_i32, %c0_i32_0 : i32, i32
  }
  func.func @transform_9(%arg0: i32) -> (i32, i32) {
    %c0_i32 = arith.constant 0 : i32
    %c0_i32_0 = arith.constant 0 : i32
    return %arg0, %c0_i32 : i32, i32
  }
}

</mosaic_0001>

<bundles_post_ra>
// kernel: mlp_regression_forward.1
= control target key start
LH: loop header
LB: loop body
LE: loop exit
PB: predicated region body
PF: predicated region fallthrough
CT: control target
= control target key end

     0   :  { %14 = vsyncpa [#allocation3], 0  ;;  %s1053_s0 = inlined_call_operand.vmem [shape: bf16[8,32], index: 0, kind: input, shape index: {}]   ;;  %s1054_s1 = inlined_call_operand.hbm [shape: bf16[32,256], index: 1, kind: input, shape index: {}]   ;;  %s1055_s2 = inlined_call_operand.vmem [shape: f32[1,256], index: 2, kind: input, shape index: {}]   ;;  %s1056_s3 = inlined_call_operand.hbm [shape: bf16[256,128], index: 3, kind: input, shape index: {}]   ;;  %s1057_s4 = inlined_call_operand.vmem [shape: f32[1,128], index: 4, kind: input, shape index: {}]   ;;  %s1058_s5 = inlined_call_operand.hbm [shape: bf16[128,128], index: 5, kind: input, shape index: {}]   ;;  %s1059_s6 = inlined_call_operand.vmem [shape: f32[1,128], index: 6, kind: input, shape index: {}]   ;;  %s1060_s7 = inlined_call_operand.hbm [shape: bf16[128,128], index: 7, kind: input, shape index: {}]   ;;  %s1061_s8 = inlined_call_operand.vmem [shape: f32[1,128], index: 8, kind: input, shape index: {}]   ;;  %s1062_s9 = inlined_call_operand.hbm [shape: f32[8,128], index: 9, kind: output, shape index: {}]  }
   0x1   :  { %15 = vsyncpa [#allocation6], 0 }
   0x2   :  { %16 = vsyncpa [#allocation9], 0 }
   0x3   :  { %17 = vsyncpa [#allocation4], 0  ;;  %s882_s30 = smov [#allocation5]   ;;  %s764_s13 = scalar_lea.hbm %s1056_s3, 2048 }
   0x4   :  { %s39_s10 = sshll.u32 %s882_s30, 4  ;;  %p765_p0 = scmp.ne.s32.totalorder %s1056_s3, %s764_s13  ;;  %s40_s10 = int_to_ptr.vmem [resolvable:$true] %s39_s10 }
   0x5   :  { %p768_p1 = scmp.lt.u32.totalorder %s764_s13, %s1056_s3 }
   0x7   :  { %p770_p2 = pnand %p768_p1, %p765_p0 }
   0x9   :  { %773 = shalt.err (!%p770_p2)
}
   0xa   :  { %s774_s18 = scalar_lea.vmem %s40_s10, 2048  ;;  %p779_p4 = scmp.lt.s32.totalorder %s40_s10, %s40_s10 }
   0xb   :  { %p775_p3 = scmp.ne.s32.totalorder %s40_s10, %s774_s18  ;;  %p780_p5 = scmp.lt.s32.totalorder %s774_s18, %s774_s18 }
   0xd   :  { %p781_p6 = por %p780_p5, %p779_p4 }
   0xf   :  { %p782_p7 = pnand %p781_p6, %p775_p3 }
  0x11   :  { %785 = shalt.err (!%p782_p7)
}
  0x12   :  { %s883_s19 = smov 64   ;;  %s884_s20 = smov 4  }
  0x13   :  { %45 = dma.hbm_to_vmem [thread:$0]  %s1056_s3, 2048, %s40_s10, [#allocation6], %s883_s19, %s883_s19, %s884_s20  }
  0x14   :  { %s885_s23 = smov [#allocation2]   ;;  %s786_s27 = scalar_lea.hbm %s1054_s1, 512 }
  0x15   :  { %s25_s24 = sshll.u32 %s885_s23, 4  ;;  %p787_p8 = scmp.ne.s32.totalorder %s1054_s1, %s786_s27  ;;  %s26_s24 = int_to_ptr.vmem [resolvable:$true] %s25_s24 }
  0x16   :  { %p790_p9 = scmp.lt.u32.totalorder %s786_s27, %s1054_s1 }
  0x18   :  { %p792_p10 = pnand %p790_p9, %p787_p8 }
  0x1a   :  { %795 = shalt.err (!%p792_p10)
}
  0x1b   :  { %s796_s12 = scalar_lea.vmem %s26_s24, 512  ;;  %p801_p12 = scmp.lt.s32.totalorder %s26_s24, %s26_s24 }
  0x1c   :  { %p797_p11 = scmp.ne.s32.totalorder %s26_s24, %s796_s12  ;;  %p802_p13 = scmp.lt.s32.totalorder %s796_s12, %s796_s12 }
  0x1e   :  { %p803_p0 = por %p802_p13, %p801_p12 }
  0x20   :  { %p804_p1 = pnand %p803_p0, %p797_p11 }
  0x22   :  { %807 = shalt.err (!%p804_p1)
}
  0x23   :  { %s886_s3 = smov 128   ;;  %s887_s10 = smov 8  }
  0x24   :  { %31 = dma.hbm_to_vmem [thread:$0]  %s1054_s1, 512, %s26_s24, [#allocation3], %s886_s3, %s886_s3, %s887_s10  }
  0x25   :  { %s888_s15 = smov [#allocation7]   ;;  %s889_s17 = smov [#allocation8]  }
  0x26   :  { %s53_s16 = sshll.u32 %s888_s15, 4  ;;  %s67_s18 = sshll.u32 %s889_s17, 4  ;;  %s54_s16 = int_to_ptr.vmem [resolvable:$true] %s53_s16  ;;  %s971_s18 = int_to_ptr.vmem [resolvable:$true] %s67_s18 }
  0x27   :  { %s808_s23 = scalar_lea.hbm %s1058_s5, 1024 }
  0x28   :  { %p809_p2 = scmp.ne.s32.totalorder %s1058_s5, %s808_s23  ;;  %p812_p3 = scmp.lt.u32.totalorder %s808_s23, %s1058_s5 }
  0x2a   :  { %p814_p4 = pnand %p812_p3, %p809_p2 }
  0x2c   :  { %817 = shalt.err (!%p814_p4)
}
  0x2d   :  { %s818_s1 = scalar_lea.vmem %s54_s16, 1024  ;;  %p823_p6 = scmp.lt.s32.totalorder %s54_s16, %s54_s16 }
  0x2e   :  { %p819_p5 = scmp.ne.s32.totalorder %s54_s16, %s818_s1  ;;  %p824_p7 = scmp.lt.s32.totalorder %s818_s1, %s818_s1 }
  0x30   :  { %p825_p8 = por %p824_p7, %p823_p6 }
  0x32   :  { %p826_p9 = pnand %p825_p8, %p819_p5 }
  0x34   :  { %829 = shalt.err (!%p826_p9)
}
  0x35   :  { %59 = dma.hbm_to_vmem [thread:$0]  %s1058_s5, 1024, %s54_s16, [#allocation6], %s883_s19, %s883_s19, %s884_s20  }
  0x36   :  { %s830_s12 = scalar_lea.hbm %s1060_s7, 1024 }
  0x37   :  { %p831_p10 = scmp.ne.s32.totalorder %s1060_s7, %s830_s12  ;;  %p834_p11 = scmp.lt.u32.totalorder %s830_s12, %s1060_s7 }
  0x39   :  { %p836_p12 = pnand %p834_p11, %p831_p10 }
  0x3b   :  { %839 = shalt.err (!%p836_p12)
}
  0x3c   :  { %s840_s15 = scalar_lea.vmem %s971_s18, 1024  ;;  %p845_p0 = scmp.lt.s32.totalorder %s971_s18, %s971_s18 }
  0x3d   :  { %p841_p13 = scmp.ne.s32.totalorder %s971_s18, %s840_s15  ;;  %p846_p1 = scmp.lt.s32.totalorder %s840_s15, %s840_s15 }
  0x3f   :  { %p847_p2 = por %p846_p1, %p845_p0 }
  0x41   :  { %p848_p3 = pnand %p847_p2, %p841_p13 }
  0x43   :  { %851 = shalt.err (!%p848_p3)
}
  0x44   :  { %73 = dma.hbm_to_vmem [thread:$0]  %s1060_s7, 1024, %s971_s18, [#allocation9], %s883_s19, %s883_s19, %s884_s20  }
  0x45   :  { %874 = dma.done.wait [#allocation3], 512  }
  0x46   :  { %875 = vsyncadd [#allocation3], 4294966784 }
  0x47   :  { %876 = dma.done.wait [#allocation6], 3072  }
  0x48   :  { %877 = vsyncadd [#allocation6], 4294964224 }
  0x49   :  { %878 = dma.done.wait [#allocation9], 1024  }
  0x4a   :  { %879 = vsyncadd [#allocation9], 4294966272  ;;  %v890_v0 = vmov 0   ;;  %v726_v1 = vld [vmem:[#allocation2 + $0x4] ss:$8 sps:$4 sm:$0xff]   ;;  %vm126_vm0 = vcmask 261120   ;;  %v96_v29 = vlaneseq }
  0x4b   :  { %162 = vmatprep.mubr.bf16.mxu0 %v890_v0  ;;  %v728_v2 = vld [vmem:[#allocation2] ss:$8 sps:$4 sm:$0xff]   ;;  %130 = vmatprep.subr.bf16.mxu0 %v726_v1  ;;  %v729_v3 = vld [vmem:[#allocation2 + $0x14] ss:$8 sps:$4 sm:$0xff]   ;;  %v731_v4 = vld [vmem:[#allocation2 + $0x10] ss:$8 sps:$4 sm:$0xff]  }
  0x4c   :  { %131 = vmatpush1.bf16.msra.mxu0 %v728_v2  ;;  %v732_v5 = vld [vmem:[#allocation5 + $0x40] sm:$0xff]   ;;  %v734_v8 = vld [vmem:[#allocation5 + $0x48] sm:$0xff]   ;;  %v736_v10 = vld [vmem:[#allocation5 + $0x50] sm:$0xff]   ;;  %v891_v23 = vmov 0.0   ;;  %v97_v30 = vshrl.u32 %v96_v29, 7  ;;  %vm892_vm1 = vmmov 0  }
  0x4d   :  { %132 = vmatprep.subr.bf16.mxu0 %v729_v3  ;;  %v733_v6 = vld [vmem:[#allocation5] sm:$0xff]   ;;  %634 = vmatprep.subr.bf16.mxu1 %v732_v5  ;;  %v735_v9 = vld [vmem:[#allocation5 + $0x8] sm:$0xff]   ;;  %v737_v11 = vld [vmem:[#allocation5 + $0x10] sm:$0xff]   ;;  %s893_s23 = smov [#allocation10]  }
  0x4e   :  { %v89_v7 = vld [vmem:[%s1053_s0] sm:$0xf]  ;;  %635 = vmatpush3.bf16.msra.mxu1 %v733_v6  ;;  %v738_v12 = vld [vmem:[#allocation5 + $0x58] sm:$0xff]   ;;  %v742_v16 = vld [vmem:[#allocation5 + $0x68] sm:$0xff]   ;;  %v98_v31 = vsub.s32 0, %v97_v30  ;;  %v102_v33 = vsub.s32 1, %v97_v30 }
  0x4f   :  { %636 = vmatprep.subr.bf16.mxu1 %v734_v8  ;;  %v739_v13 = vld [vmem:[#allocation5 + $0x18] sm:$0xff]   ;;  %v740_v14 = vld [vmem:[#allocation5 + $0x60] sm:$0xff]   ;;  %v743_v17 = vld [vmem:[#allocation5 + $0x28] sm:$0xff]   ;;  %s583_s25 = sshll.u32 %s893_s23, 4  ;;  %s584_s25 = int_to_ptr.vmem [resolvable:$true] %s583_s25 }
  0x50   :  { %133 = vmatpush1.bf16.msra.mxu0 %v731_v4  ;;  %v741_v15 = vld [vmem:[#allocation5 + $0x20] sm:$0xff]   ;;  %v744_v18 = vld [vmem:[#allocation5 + $0x70] sm:$0xff]   ;;  %v746_v20 = vld [vmem:[#allocation5 + $0x78] sm:$0xff]   ;;  %p857_p5 = scmp.lt.s32.totalorder %s584_s25, %s584_s25 }
  0x51   :  { %v745_v19 = vld [vmem:[#allocation5 + $0x30] sm:$0xff]   ;;  %v747_v21 = vld [vmem:[#allocation5 + $0x38] sm:$0xff]   ;;  %v748_v22 = vld [vmem:[#allocation7] sm:$0xff]   ;;  %674 = vmatprep.subr.bf16.mxu0 %v891_v23 }
  0x52   :  { %637 = vmatpush3.bf16.msra.mxu1 %v735_v9  ;;  %v749_v24 = vld [vmem:[#allocation7 + $0x8] sm:$0xff]   ;;  %v750_v25 = vld [vmem:[#allocation7 + $0x10] sm:$0xff]   ;;  %v751_v26 = vld [vmem:[#allocation7 + $0x18] sm:$0xff]  }
  0x53   :  { %598 = vmatmul.mubr.msk.bf16.vlgmr.msra.gmra.mrb[0].mxu0 %vm126_vm0, %v89_v7  ;;  %638 = vmatprep.subr.bf16.mxu1 %v736_v10  ;;  %v752_v27 = vld [vmem:[#allocation7 + $0x20] sm:$0xff]   ;;  %v753_v28 = vld [vmem:[#allocation7 + $0x28] sm:$0xff]   ;;  %v754_v46 = vld [vmem:[#allocation7 + $0x30] sm:$0xff]  }
  0x54   :  { %675 = vmatpush3.bf16.msra.mxu0 %v748_v22  ;;  %v94_v32 = vld [vmem:[%s1055_s2] sm:$0x3]  ;;  %v755_v47 = vld [vmem:[#allocation7 + $0x38] sm:$0xff]   ;;  %690 = vmatprep.mubr.msk.bf16.mxu0 %vm892_vm1, %v891_v23  ;;  %v757_v49 = vld [vmem:[#allocation8 + $0x8] sm:$0xff]  }
  0x55   :  { %676 = vmatprep.subr.bf16.mxu0 %v891_v23  ;;  %v99_v34 = vrot.slane %v94_v32, %v98_v31  ;;  %v103_v35 = vrot.slane %v94_v32, %v102_v33  ;;  %v756_v48 = vld [vmem:[#allocation8] sm:$0xff]   ;;  %v758_v50 = vld [vmem:[#allocation8 + $0x10] sm:$0xff]   ;;  %v759_v51 = vld [vmem:[#allocation8 + $0x18] sm:$0xff]  }
  0x56   :  { %639 = vmatpush3.bf16.msra.mxu1 %v737_v11  ;;  %v760_v52 = vld [vmem:[#allocation8 + $0x20] sm:$0xff]   ;;  %v761_v53 = vld [vmem:[#allocation8 + $0x28] sm:$0xff]   ;;  %v762_v63 = vld [vmem:[#allocation8 + $0x30] sm:$0xff]  }
  0x57   :  { %640 = vmatprep.subr.bf16.mxu1 %v738_v12  ;;  %v599_v55 = vld [vmem:[%s1057_s4] ss:$0 sm:$0xff]  ;;  %v763_v0 = vld [vmem:[#allocation8 + $0x38] sm:$0xff]  }
  0x58   :  { %677 = vmatpush3.bf16.msra.mxu0 %v749_v24  ;;  %v616_v1 = vld [vmem:[%s1059_s6] ss:$0 sm:$0xff]  ;;  %s852_s6 = scalar_lea.vmem %s584_s25, 128 }
  0x59   :  { %678 = vmatprep.subr.bf16.mxu0 %v891_v23  ;;  %v625_v9 = vld [vmem:[%s1061_s8] ss:$0 sm:$0xff]  ;;  %p853_p4 = scmp.ne.s32.totalorder %s584_s25, %s852_s6  ;;  %p858_p6 = scmp.lt.s32.totalorder %s852_s6, %s852_s6 }
  0x5a   :  { %641 = vmatpush3.bf16.msra.mxu1 %v739_v13 }
  0x5b   :  { %642 = vmatprep.subr.bf16.mxu1 %v740_v14  ;;  %p859_p7 = por %p858_p6, %p857_p5 }
  0x5c   :  { %679 = vmatpush3.bf16.msra.mxu0 %v750_v25 }
  0x5d   :  { %680 = vmatprep.subr.bf16.mxu0 %v891_v23  ;;  %p860_p8 = pnand %p859_p7, %p853_p4 }
  0x5e   :  { %643 = vmatpush3.bf16.msra.mxu1 %v741_v15 }
  0x5f   :  { %644 = vmatprep.subr.bf16.mxu1 %v742_v16 }
  0x60   :  { %681 = vmatpush3.bf16.msra.mxu0 %v751_v26 }
  0x61   :  { %682 = vmatprep.subr.bf16.mxu0 %v891_v23 }
  0x62   :  { %645 = vmatpush3.bf16.msra.mxu1 %v743_v17 }
  0x63   :  { %646 = vmatprep.subr.bf16.mxu1 %v744_v18 }
  0x64   :  { %683 = vmatpush3.bf16.msra.mxu0 %v752_v27 }
  0x65   :  { %684 = vmatprep.subr.bf16.mxu0 %v891_v23 }
  0x66   :  { %647 = vmatpush3.bf16.msra.mxu1 %v745_v19 }
  0x67   :  { %648 = vmatprep.subr.bf16.mxu1 %v746_v20 }
  0x68   :  { %685 = vmatpush3.bf16.msra.mxu0 %v753_v28 }
  0x69   :  { %686 = vmatprep.subr.bf16.mxu0 %v891_v23 }
  0x6a   :  { %649 = vmatpush3.bf16.msra.mxu1 %v747_v21 }
  0x6b   :  { %694 = vmatprep.subr.bf16.mxu1 %v891_v23 }
  0x6c   :  { %687 = vmatpush3.bf16.msra.mxu0 %v754_v46 }
  0x6d   :  { %688 = vmatprep.subr.bf16.mxu0 %v891_v23 }
  0x70   :  { %689 = vmatpush3.bf16.msra.mxu0 %v755_v47 }
 0x126   :  { %v164_v36 = vpop.f32.mrb[0].mxu0 }
 0x127   :  { %v165_v37 = vadd.f32 %v164_v36, %v99_v34  ;;  %v166_v38 = vpop.f32.mrb[1].mxu0 }
 0x128   :  { %v167_v39 = vadd.f32 %v166_v38, %v103_v35  ;;  %v168_v40 = vpop.f32.mrb[2].mxu0 }
 0x129   :  { %v171_v41 = vmax.f32 %v165_v37, 0.0  ;;  %v169_v42 = vpop.f32.mrb[3].mxu0 }
 0x12a   :  { %v172_v43 = vmax.f32 %v167_v39, 0.0 }
 0x12b   :  { %v173_v45 = vpack.c.bf16 %v171_v41, %v171_v41 }
 0x12c   :  { %v174_v44 = vpack.c.bf16 %v172_v43, %v172_v43 }
 0x12e   :  { %342 = vmatprep.mubr.bf16.mxu1 %v174_v44 }
 0x12f   :  { %343 = vmatmul.mubr.bf16.vlgmr.msra.gmra.mrb[0].mxu1 %v173_v45 }
 0x130   :  { %710 = vmatprep.mubr.msk.bf16.mxu1 %vm892_vm1, %v891_v23  ;;  %695 = vmatpush3.bf16.msra.mxu1 %v756_v48 }
 0x131   :  { %696 = vmatprep.subr.bf16.mxu1 %v891_v23 }
 0x134   :  { %697 = vmatpush3.bf16.msra.mxu1 %v757_v49 }
 0x135   :  { %698 = vmatprep.subr.bf16.mxu1 %v891_v23 }
 0x138   :  { %699 = vmatpush3.bf16.msra.mxu1 %v758_v50 }
 0x139   :  { %700 = vmatprep.subr.bf16.mxu1 %v891_v23 }
 0x13c   :  { %701 = vmatpush3.bf16.msra.mxu1 %v759_v51 }
 0x13d   :  { %702 = vmatprep.subr.bf16.mxu1 %v891_v23 }
 0x140   :  { %703 = vmatpush3.bf16.msra.mxu1 %v760_v52 }
 0x141   :  { %704 = vmatprep.subr.bf16.mxu1 %v891_v23 }
 0x144   :  { %705 = vmatpush3.bf16.msra.mxu1 %v761_v53 }
 0x145   :  { %706 = vmatprep.subr.bf16.mxu1 %v891_v23 }
 0x148   :  { %707 = vmatpush3.bf16.msra.mxu1 %v762_v63 }
 0x149   :  { %708 = vmatprep.subr.bf16.mxu1 %v891_v23 }
 0x14c   :  { %709 = vmatpush3.bf16.msra.mxu1 %v763_v0 }
 0x202   :  { %v650_v54 = vpop.f32.mrb[0].mxu1 }
 0x203   :  { %v651_v56 = vpop.f32.mrb[1].mxu1 }
 0x204   :  { %v652_v57 = vadd.f32 %v651_v56, %v650_v54  ;;  %v653_v58 = vpop.f32.mrb[2].mxu1 }
 0x205   :  { %v654_v59 = vpop.f32.mrb[3].mxu1 }
 0x206   :  { %v345_v60 = vadd.f32 %v652_v57, %v599_v55 }
 0x208   :  { %v350_v61 = vmax.f32 %v345_v60, 0.0 }
 0x20a   :  { %v351_v62 = vpack.c.bf16 %v350_v61, %v350_v61 }
 0x20c   :  { %691 = vmatmul.mubr.bf16.vlgmr.msra.gmra.mrb[4].mxu0 %v351_v62 }
 0x2df   :  { %v457_v2 = vpop.f32.mrb[4].mxu0 }
 0x2e0   :  { %v458_v3 = vadd.f32 %v616_v1, %v457_v2  ;;  %v692_v4 = vpop.f32.mrb[5].mxu0 }
 0x2e1   :  { %v460_v5 = vpop.f32.mrb[6].mxu0 }
 0x2e2   :  { %v463_v6 = vmax.f32 %v458_v3, 0.0  ;;  %v693_v7 = vpop.f32.mrb[7].mxu0 }
 0x2e4   :  { %v464_v8 = vpack.c.bf16 %v463_v6, %v463_v6 }
 0x2e6   :  { %711 = vmatmul.mubr.bf16.vlgmr.msra.gmra.mrb[4].mxu1 %v464_v8 }
 0x3b9   :  { %v570_v10 = vpop.f32.mrb[4].mxu1 }
 0x3ba   :  { %v571_v11 = vadd.f32 %v625_v9, %v570_v10  ;;  %v712_v12 = vpop.f32.mrb[5].mxu1 }
 0x3bb   :  { %v573_v13 = vpop.f32.mrb[6].mxu1 }
 0x3bc   :  { %576 = vst [vmem:[#allocation10] sm:$0xff] %v571_v11  ;;  %v713_v14 = vpop.f32.mrb[7].mxu1 }
 0x3bd   :  { %863 = shalt.err (!%p860_p8)
}
 0x3be   :  { %s864_s8 = scalar_lea.hbm %s1062_s9, 128 }
 0x3bf   :  { %p865_p9 = scmp.ne.s32.totalorder %s1062_s9, %s864_s8  ;;  %p868_p10 = scmp.lt.u32.totalorder %s864_s8, %s1062_s9 }
 0x3c1   :  { %p870_p11 = pnand %p868_p10, %p865_p9 }
 0x3c3   :  { %873 = shalt.err (!%p870_p11)
}
 0x3c4   :  { %586 = dma.vmem_to_hbm [thread:$0]  %s584_s25, 128, %s1062_s9, [#allocation4]  }
 0x3c5   :  { %880 = dma.done.wait [#allocation4], 128  }
 0x3c6   :  { %881 = vsyncadd [#allocation4], 4294967168 }
 0x3c7   :  { %590 = vsyncpa [#allocation3], 1 }
 0x3c8   :  { %591 = vsyncpa [#allocation6], 1 }
 0x3c9   :  { %592 = vsyncpa [#allocation9], 1 }
 0x3ca   :  { %593 = vsyncpa [#allocation4], 1 }

</bundles_post_ra>
